<compile_context>
chip_gen: v7x
topology: tpu7x:2x2x1
jax: 0.10.0
libtpu: 0.0.40
codegen_flags: <defaults>
</compile_context>

<pallas_src>
import jax
import jax.numpy as jnp
from jax.experimental import pallas as pl
from jax.experimental.pallas import tpu as pltpu


def se_kernel(x_ref, w1c_ref, w2t_ref, out_ref, gate_ref):
    # x_ref block: (TB, C, H*W), native dtype, lane-dense last axis.
    x = x_ref[...]
    w = gate_ref.shape[-1]  # == channels == original W axis

    # squeeze: f32-accumulating sum over the channel (sublane) axis -> (TB, H*W)
    # (no full-block f32 temporary for bf16 inputs).
    xs = jnp.sum(x, axis=1, dtype=jnp.float32)

    # excite, step 1: mean scale + fold-over-H + fc1 are baked into w1c
    # (shape (H*W, C//r)), so one matmul gives fc1(avg_pool(x.transpose(1,3))).
    h1 = jnp.maximum(
        jnp.dot(xs, w1c_ref[...], preferred_element_type=jnp.float32), 0.0)   # (TB, C//r)

    # excite, step 2: fc2 weights pre-tiled to (C//r, H*W) -> the matmul emits a
    # lane-dense gate that is already broadcast across H.
    g_tiled = jax.nn.sigmoid(
        jnp.dot(h1, w2t_ref[...], preferred_element_type=jnp.float32))        # (TB, H*W)

    # gate per channel (== per original W index) is the first W lanes.
    gate_ref[...] = g_tiled[:, None, :w].astype(gate_ref.dtype)               # (TB, 1, C)

    # scale: keep the dominant elementwise pass + store in the input dtype.
    out_ref[...] = (x * g_tiled.astype(x.dtype)[:, None, :]).astype(out_ref.dtype)


def _vmem_limit_bytes():
    """Scoped-VMEM limit derived from the actual chip, with headroom."""
    try:
        cap = int(pltpu.get_tpu_info().vmem_capacity_bytes)
    except Exception:
        cap = 64 << 20          # conservative fallback (v7x per-TC physical VMEM)
    # Use ~3/4 of physical VMEM, capped so the compiler always keeps headroom.
    return int(min(cap * 3 // 4, 100 << 20))


def _pick_tb(n, per_batch_bytes, block_budget_bytes):
    """Largest batch tile under the VMEM budget, preferring an even step count."""
    cap = max(1, int(block_budget_bytes) // int(per_batch_bytes))
    cap = min(cap, n)
    # Prefer an even number of grid steps (the "parallel" batch axis shards
    # across v7x's 2 TensorCores) as long as TB stays >= cap // 2.
    for cand in range(cap, max(1, cap // 2) - 1, -1):
        if (-(-n // cand)) % 2 == 0:
            return cand
    return cap


def se_module(x, w1, w2, *, tb=None):
    """x: (N, C, H, W); w1: (C//r, C, 1, 1); w2: (C, C//r, 1, 1)."""
    N, C, H, W = x.shape
    assert W == C, "SEModule's transpose(1, 3) requires W == channels"
    cr = w1.shape[0]
    HW = H * W

    # ---- host-side (free) layout & weight prep ------------------------------
    x3 = x.reshape(N, C, HW)                       # lane-dense blocks, no in-kernel reshape
    inv = 1.0 / (C * H)                            # mean folded into fc1 weights
    w1_2d = w1.reshape(cr, C)
    w2_2d = w2.reshape(C, cr)
    w1c = jnp.tile(jnp.transpose(w1_2d) * inv, (H, 1)).astype(jnp.float32)   # (H*W, C//r)
    w2t = jnp.tile(jnp.transpose(w2_2d), (1, H)).astype(jnp.float32)         # (C//r, H*W)

    # ---- VMEM budget & batch tile size --------------------------------------
    vmem_limit = _vmem_limit_bytes()
    weights_bytes = 2 * HW * cr * 4                # single-buffered f32 tiled weights
    per_batch_bytes = C * HW * x.dtype.itemsize
    # 4 streaming block copies (double-buffered x in + out) + ~1/3 slack for the
    # gate buffers and compiler scratch.
    block_budget = max(per_batch_bytes, (vmem_limit - weights_bytes) // 6)
    if tb is None:
        tb = _pick_tb(N, per_batch_bytes, block_budget)
    grid = (pl.cdiv(N, tb),)                       # partial tail block is masked by Pallas

    cost = pl.CostEstimate(
        flops=int(4 * N * HW * cr + 2 * N * C * HW),          # two matmuls + squeeze/scale
        transcendentals=int(N * HW),                          # sigmoid
        bytes_accessed=int(2 * N * C * HW * x.dtype.itemsize  # stream x in, out back
                           + weights_bytes
                           + N * C * x.dtype.itemsize),       # gate
    )

    out3, gate = pl.pallas_call(
        se_kernel,
        out_shape=(
            jax.ShapeDtypeStruct((N, C, HW), x.dtype),
            jax.ShapeDtypeStruct((N, 1, C), x.dtype),
        ),
        grid_spec=pltpu.PrefetchScalarGridSpec(
            num_scalar_prefetch=0,
            grid=grid,
            in_specs=[
                pl.BlockSpec((tb, C, HW), lambda n: (n, 0, 0)),
                # grid-invariant weights: single-buffered (index_map is constant)
                pl.BlockSpec((HW, cr), lambda n: (0, 0), pipeline_mode=pl.Buffered(1)),
                pl.BlockSpec((cr, HW), lambda n: (0, 0), pipeline_mode=pl.Buffered(1)),
            ],
            out_specs=[
                pl.BlockSpec((tb, C, HW), lambda n: (n, 0, 0)),
                pl.BlockSpec((tb, 1, C), lambda n: (n, 0, 0)),
            ],
        ),
        compiler_params=pltpu.CompilerParams(
            dimension_semantics=("parallel",),
            vmem_limit_bytes=vmem_limit,
        ),
        cost_estimate=cost,
    )(x3, w1c, w2t)
    return out3.reshape(N, C, H, W), gate.reshape(N, 1, 1, C)


if __name__ == "__main__":
    key = jax.random.PRNGKey(0)
    N, C, H, reduction = 2, 16, 8, 4
    W = C                      # the module only works when W == channels
    cr = C // reduction

    kx, k1, k2 = jax.random.split(key, 3)
    x = jax.random.normal(kx, (N, C, H, W), dtype=jnp.float32)

    # fc1: xavier_uniform (as in __init__); fc2: uniform init (deterministic, synthetic)
    bound1 = (6.0 / (C + cr)) ** 0.5
    w1 = jax.random.uniform(k1, (cr, C, 1, 1), minval=-bound1, maxval=bound1,
                            dtype=jnp.float32)
    bound2 = (6.0 / (cr + C)) ** 0.5
    w2 = jax.random.uniform(k2, (C, cr, 1, 1), minval=-bound2, maxval=bound2,
                            dtype=jnp.float32)

    out, gate = se_module(x, w1, w2)
    jax.block_until_ready((out, gate))

    # pure-JAX reference (mirrors the PyTorch forward exactly)
    s_ref = jnp.mean(x, axis=(1, 2))                              # mean over (C, H) -> (N, W)
    h_ref = jnp.maximum(s_ref @ w1.reshape(cr, C).T, 0.0)
    g_ref = jax.nn.sigmoid(h_ref @ w2.reshape(C, cr).T)           # (N, C)
    ref_out = x * g_ref[:, None, None, :]
    ref_gate = g_ref[:, None, None, :]

    assert jnp.allclose(out, ref_out, atol=1e-5, rtol=1e-5)
    assert jnp.allclose(gate, ref_gate, atol=1e-5, rtol=1e-5)
    print("KERNEL_OK")
</pallas_src>

<mosaic_0001>
module attributes {stable_mosaic.version = 11 : i64} {
  func.func @se_kernel(%arg0: i32, %arg1: memref<1x16x128xf32, #tpu.memory_space<vmem>>, %arg2: memref<128x4xf32, #tpu.memory_space<vmem>>, %arg3: memref<4x128xf32, #tpu.memory_space<vmem>>, %arg4: memref<1x16x128xf32, #tpu.memory_space<vmem>>, %arg5: memref<1x1x16xf32, #tpu.memory_space<vmem>>) attributes {dimension_semantics = [#tpu.dimension_semantics<parallel>], iteration_bounds = array<i64: 2>, scalar_prefetch = 0 : i64, scratch_operands = 0 : i64, tpu.core_type = #tpu.core_type<tc>, window_params = [{transform_indices = @transform_0, window_bounds = array<i64: 1, 16, 128>}, {pipeline_mode = #tpu.pipeline_mode<synchronous>, transform_indices = @transform_1, window_bounds = array<i64: 128, 4>}, {pipeline_mode = #tpu.pipeline_mode<synchronous>, transform_indices = @transform_2, window_bounds = array<i64: 4, 128>}, {transform_indices = @transform_3, window_bounds = array<i64: 1, 16, 128>}, {transform_indices = @transform_4, window_bounds = array<i64: 1, 1, 16>}]} {
    %c0 = arith.constant 0 : index
    %c0_0 = arith.constant 0 : index
    %c0_1 = arith.constant 0 : index
    %0 = vector.load %arg1[%c0, %c0_0, %c0_1] : memref<1x16x128xf32, #tpu.memory_space<vmem>>, vector<1x16x128xf32>
    %cst = arith.constant dense<0.000000e+00> : vector<1x128xf32>
    %1 = vector.multi_reduction <add>, %0, %cst [1] : vector<1x16x128xf32> to vector<1x128xf32>
    %c0_2 = arith.constant 0 : index
    %c0_3 = arith.constant 0 : index
    %2 = vector.load %arg2[%c0_2, %c0_3] : memref<128x4xf32, #tpu.memory_space<vmem>>, vector<128x4xf32>
    %cst_4 = arith.constant dense<0.000000e+00> : vector<1x4xf32>
    %3 = tpu.matmul %1, %2, %cst_4 {dimension_numbers = #tpu.dot_dimension_numbers<[1], [0], [0], [1], [0, 0, 1, 1], [], []>} : vector<1x128xf32>, vector<128x4xf32>, vector<1x4xf32> -> vector<1x4xf32>
    %cst_5 = arith.constant 0.000000e+00 : f32
    %4 = vector.broadcast %cst_5 : f32 to vector<1x4xf32>
    %5 = arith.maximumf %3, %4 : vector<1x4xf32>
    %c0_6 = arith.constant 0 : index
    %c0_7 = arith.constant 0 : index
    %6 = vector.load %arg3[%c0_6, %c0_7] : memref<4x128xf32, #tpu.memory_space<vmem>>, vector<4x128xf32>
    %cst_8 = arith.constant dense<0.000000e+00> : vector<1x128xf32>
    %7 = tpu.matmul %5, %6, %cst_8 {dimension_numbers = #tpu.dot_dimension_numbers<[1], [0], [0], [1], [0, 0, 1, 1], [], []>} : vector<1x4xf32>, vector<4x128xf32>, vector<1x128xf32> -> vector<1x128xf32>
    %8 = arith.negf %7 : vector<1x128xf32>
    %9 = math.exp %8 : vector<1x128xf32>
    %cst_9 = arith.constant 1.000000e+00 : f32
    %10 = vector.broadcast %cst_9 : f32 to vector<1x128xf32>
    %11 = arith.addf %10, %9 : vector<1x128xf32>
    %12 = arith.divf %10, %11 : vector<1x128xf32>
    %13 = vector.extract_strided_slice %12 {offsets = [0, 0], sizes = [1, 16], strides = [1, 1]} : vector<1x128xf32> to vector<1x16xf32>
    %14 = vector.shape_cast %13 : vector<1x16xf32> to vector<1x1x16xf32>
    %c0_10 = arith.constant 0 : index
    %c0_11 = arith.constant 0 : index
    %c0_12 = arith.constant 0 : index
    %15 = vector.load %arg5[%c0_10, %c0_11, %c0_12] : memref<1x1x16xf32, #tpu.memory_space<vmem>>, vector<1x1x16xf32>
    tpu.vector_store %arg5[%c0_10, %c0_11, %c0_12], %14 {strides = array<i32>} : memref<1x1x16xf32, #tpu.memory_space<vmem>>, vector<1x1x16xf32>,
    %16 = vector.shape_cast %12 : vector<1x128xf32> to vector<1x1x128xf32>
    %17 = vector.broadcast %16 : vector<1x1x128xf32> to vector<1x16x128xf32>
    %18 = arith.mulf %0, %17 : vector<1x16x128xf32>
    %c0_13 = arith.constant 0 : index
    %c0_14 = arith.constant 0 : index
    %c0_15 = arith.constant 0 : index
    %19 = vector.load %arg4[%c0_13, %c0_14, %c0_15] : memref<1x16x128xf32, #tpu.memory_space<vmem>>, vector<1x16x128xf32>
    tpu.vector_store %arg4[%c0_13, %c0_14, %c0_15], %18 {strides = array<i32>} : memref<1x16x128xf32, #tpu.memory_space<vmem>>, vector<1x16x128xf32>,
    return
  }
  func.func @transform_0(%arg0: i32) -> (i32, i32, i32) {
    %c0_i32 = arith.constant 0 : i32
    %c0_i32_0 = arith.constant 0 : i32
    %c0_i32_1 = arith.constant 0 : i32
    return %arg0, %c0_i32, %c0_i32_0 : i32, i32, i32
  }
  func.func @transform_1(%arg0: i32) -> (i32, i32) {
    %c0_i32 = arith.constant 0 : i32
    %c0_i32_0 = arith.constant 0 : i32
    %c0_i32_1 = arith.constant 0 : i32
    return %c0_i32, %c0_i32_0 : i32, i32
  }
  func.func @transform_2(%arg0: i32) -> (i32, i32) {
    %c0_i32 = arith.constant 0 : i32
    %c0_i32_0 = arith.constant 0 : i32
    %c0_i32_1 = arith.constant 0 : i32
    return %c0_i32, %c0_i32_0 : i32, i32
  }
  func.func @transform_3(%arg0: i32) -> (i32, i32, i32) {
    %c0_i32 = arith.constant 0 : i32
    %c0_i32_0 = arith.constant 0 : i32
    %c0_i32_1 = arith.constant 0 : i32
    return %arg0, %c0_i32, %c0_i32_0 : i32, i32, i32
  }
  func.func @transform_4(%arg0: i32) -> (i32, i32, i32) {
    %c0_i32 = arith.constant 0 : i32
    %c0_i32_0 = arith.constant 0 : i32
    %c0_i32_1 = arith.constant 0 : i32
    return %arg0, %c0_i32, %c0_i32_0 : i32, i32, i32
  }
}

</mosaic_0001>

<bundles_post_ra>
// kernel: tpu_custom_call.1
= control target key start
LH: loop header
LB: loop body
LE: loop exit
PB: predicated region body
PF: predicated region fallthrough
CT: control target
= control target key end

     0   :  { %10 = vsyncpa [#allocation3], 0  ;;  %s1001_s0 = inlined_call_operand.vmem [shape: f32[2,16,128], index: 0, kind: input, shape index: {}]   ;;  %s1002_s1 = inlined_call_operand.vmem [shape: f32[128,4], index: 1, kind: input, shape index: {}]   ;;  %s1003_s2 = inlined_call_operand.vmem [shape: f32[4,128], index: 2, kind: input, shape index: {}]   ;;  %s1004_s3 = inlined_call_operand.hbm [shape: f32[2,16,128], index: 3, kind: output, shape index: {0}]   ;;  %s1005_s4 = inlined_call_operand.hbm [shape: f32[2,1,16], index: 4, kind: output, shape index: {1}]  }
   0x1   :  { %12 = vsyncpa [#allocation3 + $0x1], 0 }
   0x2   :  { %13 = vsyncpa [#allocation5], 0 }
   0x3   :  { %15 = vsyncpa [#allocation5 + $0x1], 0  ;;  %s800_s15 = smov 0   ;;  %s802_s16 = smov 0  }
   0x4   :  { %s804_s17 = smov 0   ;;  %s806_s18 = smov 0  }
   0x5 LB: > { %s821_s19 = sadd.s32 4294967295, %s766_s18   ;;  %s518_s20 = sadd.s32 4294967294, %s766_s18   ;;  %s766_s18 = sphi %s806_s18, %s1011_s18   ;;  %s762_s17 = sphi %s804_s17, %s1010_s17   ;;  %s758_s16 = sphi %s802_s16, %s1009_s16   ;;  %s754_s15 = sphi %s800_s15, %s1008_s15  }
   0x6   : > { %s825_s21 = sadd.s32 1, %s766_s18   ;;  %s96_s22 = sadd.s32 1, %s762_s17 }
   0x7   : > { %s93_s23 = ssub.s32 %s766_s18, %s825_s21  ;;  %p106_p0 = scmp.ne.s32.totalorder %s762_s17, %s758_s16 }
   0x8   : > { %p94_p1 = scmp.eq.s32.totalorder %s93_s23, 0  ;;  %p107_p2 = scmp.eq.s32.totalorder %s821_s19, 1 }
   0x9   : > { %p112_p3 = scmp.ne.s32.totalorder %s758_s16, %s754_s15  ;;  %p113_p4 = scmp.eq.s32.totalorder %s518_s20, 1 }
   0xa   : > { %s836_s24 = scalar_select %p94_p1, %s762_s17, %s96_s22  }
   0xb   : > { %p838_p5 = por %p107_p2, %p106_p0  ;;  %p842_p6 = por %p113_p4, %p112_p3 }
   0xc   : > { %p521_p7 = scmp.ge.s32.totalorder %s766_s18, 1  ;;  %p171_p8 = scmp.lt.s32.totalorder %s766_s18, 3 }
   0xe   : > { %p172_p9 = pnand %p521_p7, %p171_p8 }
   0xf   : > { %v215_v0 = vld [vmem:[%s1002_s1] sm:$0xff] (!%p172_p9)  ;;  %v216_v1 = vld [vmem:[%s1002_s1 + $0x8] sm:$0xff] (!%p172_p9)  ;;  %v217_v2 = vld [vmem:[%s1002_s1 + $0x10] sm:$0xff] (!%p172_p9)  ;;  %v768_v3 = vmov (!%p172_p9), 0.0|0.0   ;;  %vm769_vm0 = vmmov (!%p172_p9), 0   ;;  %v770_v6 = vmov (!%p172_p9), 0.0   ;;  %v389_v44 = vlaneseq (!%p172_p9) }
  0x10   : > { %175 = sbr.rel (%p172_p9) target bundleno = 539 (0x21b), region = 32  ;;  %595 = vmatprep.subr.bf16.mxu0 (!%p172_p9), %v768_v3  ;;  %v596_v4 = vpack.c.bf16 (!%p172_p9), %v216_v1, %v215_v0  ;;  %v218_v5 = vld [vmem:[%s1002_s1 + $0x18] sm:$0xff] (!%p172_p9)  ;;  %587 = vmatprep.mubr.msk.f32.mxu0 (!%p172_p9), %vm769_vm0, %v770_v6  ;;  %p201_p10 = scmp.lt.s32.totalorder (!%p172_p9), %s821_s19, 1  ;;  %v219_v8 = vld [vmem:[%s1002_s1 + $0x20] sm:$0xff] (!%p172_p9)  ;;  %v220_v9 = vld [vmem:[%s1002_s1 + $0x28] sm:$0xff] (!%p172_p9)  ;;  %vm307_vm1 = vcmask (!%p172_p9), 1043456  }
  0x11   : > { %590 = vmatprep.subr.mxu1 (!%p172_p9), %v770_v6  ;;  %592 = vmatprep.mubr.msk.f32.mxu1 (!%p172_p9), %vm769_vm0, %v770_v6  ;;  %v599_v7 = vpack.c.bf16 (!%p172_p9), %v218_v5, %v217_v2  ;;  %v602_v10 = vpack.c.bf16 (!%p172_p9), %v220_v9, %v219_v8  ;;  %v221_v13 = vld [vmem:[%s1002_s1 + $0x30] sm:$0xff] (!%p172_p9)  ;;  %v222_v14 = vld [vmem:[%s1002_s1 + $0x38] sm:$0xff] (!%p172_p9)  ;;  %v223_v18 = vld [vmem:[%s1002_s1 + $0x40] sm:$0xff] (!%p172_p9)  ;;  %vm303_vm2 = vcmask (!%p172_p9), 31744   ;;  %s911_s6 = sand.u32 (!%p172_p9), 1, %s758_s16   ;;  %v390_v45 = vshrl.u32 (!%p172_p9), %v389_v44, 7 }
  0x12   : > { %597 = vmatpush3.bf16.msra.mxu0 (!%p172_p9), %v596_v4  ;;  %v605_v17 = vpack.c.bf16 (!%p172_p9), %v222_v14, %v221_v13  ;;  %v224_v19 = vld [vmem:[%s1002_s1 + $0x48] sm:$0xff] (!%p172_p9)  ;;  %v225_v22 = vld [vmem:[%s1002_s1 + $0x50] sm:$0xff] (!%p172_p9)  ;;  %v226_v23 = vld [vmem:[%s1002_s1 + $0x58] sm:$0xff] (!%p172_p9)  ;;  %s522_s7 = sshll.u32 (!%p172_p9), %s911_s6, 4  ;;  %s531_s8 = sshll.u32 (!%p172_p9), %s821_s19, 4  ;;  %vm387_vm3 = vcmask (!%p172_p9), 122880  }
  0x13   : > { %598 = vmatprep.subr.bf16.mxu0 (!%p172_p9), %v768_v3  ;;  %v608_v21 = vpack.c.bf16 (!%p172_p9), %v224_v19, %v223_v18  ;;  %v611_v25 = vpack.c.bf16 (!%p172_p9), %v226_v23, %v225_v22  ;;  %v227_v26 = vld [vmem:[%s1002_s1 + $0x60] sm:$0xff] (!%p172_p9)  ;;  %v228_v27 = vld [vmem:[%s1002_s1 + $0x68] sm:$0xff] (!%p172_p9)  ;;  %v229_v30 = vld [vmem:[%s1002_s1 + $0x70] sm:$0xff] (!%p172_p9)  ;;  %v391_v46 = vsub.s32 (!%p172_p9), 0, %v390_v45  ;;  %s535_s11 = sshll.u32 (!%p172_p9), %s821_s19, 8  ;;  %s917_s12 = scalar_lea.vmem (!%p172_p9), [#allocation2], %s522_s7 }
  0x14   : > { %v614_v29 = vpack.c.bf16 (!%p172_p9), %v228_v27, %v227_v26  ;;  %v230_v31 = vld [vmem:[%s1002_s1 + $0x78] sm:$0xff] (!%p172_p9)  ;;  %v302_v35 = vld [vmem:[%s1003_s2] sm:$0xf] (!%p172_p9)  ;;  %s415_s13 = sshll.u32 (!%p172_p9), %s917_s12, 4  ;;  %s923_s22 = scalar_lea.hbm (!%p172_p9), %s1005_s4, %s531_s8  ;;  %s932_s13 = int_to_ptr.vmem [resolvable:$true] %s415_s13 }
  0x15   : > { %v617_v33 = vpack.c.bf16 (!%p172_p9), %v230_v31, %v229_v30  ;;  %591 = vmatpush3.msk.msra.mxu1 (!%p172_p9), %vm307_vm1, %v302_v35  ;;  %s403_s28 = scalar_lea.sflag (!%p172_p9), [#allocation5], %s911_s6  ;;  %s771_s30 = smov (!%p172_p9), [#allocation4]  }
  0x16   : > { %600 = vmatpush3.bf16.msra.mxu0 (!%p172_p9), %v599_v7  ;;  %s676_s5 = sshll.u32 (!%p172_p9), %s771_s30, 4  ;;  %s677_s5 = int_to_ptr.vmem [resolvable:$false] %s676_s5 }
  0x17   : > { %s202_s9 = scalar_select %p201_p10, %s821_s19, 1  ;;  %601 = vmatprep.subr.bf16.mxu0 %v768_v3 }
  0x18   : > { %s930_s19 = scalar_lea.hbm %s1004_s3, %s535_s11  ;;  %s678_s7 = scalar_lea.vmem %s677_s5, 32 }
  0x19   : > { %s534_s14 = sshll.u32 %s202_s9, 4  ;;  %s200_s9 = scalar_lea.vmem [#allocation4], %s911_s6 }
  0x1a   : > { %s205_s23 = scalar_lea.vmem %s1001_s0, %s534_s14  ;;  %603 = vmatpush3.bf16.msra.mxu0 %v602_v10  ;;  %s431_s10 = sshll.u32 %s200_s9, 4  ;;  %s925_s10 = int_to_ptr.vmem [resolvable:$true] %s431_s10 }
  0x1b   : > { %v871_v11 = vld [vmem:[%s205_s23] sm:$0xff]  ;;  %v873_v12 = vld [vmem:[%s205_s23 + $0x8] sm:$0xff]  ;;  %604 = vmatprep.subr.bf16.mxu0 %v768_v3  ;;  %s672_s29 = scalar_lea.vmem %s925_s10, 16  ;;  %p679_p0 = scmp.lt.s32.totalorder %s925_s10, %s677_s5 }
  0x1c   : > { %v208_v15 = vadd.f32 %v873_v12, %v871_v11  ;;  %p673_p11 = scmp.ne.s32.totalorder %s925_s10, %s672_s29  ;;  %p680_p1 = scmp.lt.s32.totalorder %s678_s7, %s672_s29 }
  0x1e   : > { %v209_v16 = vrot.slane %v208_v15, 4  ;;  %606 = vmatpush3.bf16.msra.mxu0 %v605_v17  ;;  %p674_p12 = pnand %p673_p11, %p838_p5  ;;  %p681_p2 = por %p680_p1, %p679_p0 }
  0x1f   : > { %607 = vmatprep.subr.bf16.mxu0 %v768_v3 }
  0x20   : > { %v210_v20 = vadd.f32 %v209_v16, %v208_v15  ;;  %p675_p13 = pneg %p674_p12 }
  0x22   : > { %v211_v24 = vrot.slane %v210_v20, 2  ;;  %609 = vmatpush3.bf16.msra.mxu0 %v608_v21  ;;  %p682_p3 = pnand %p681_p2, %p675_p13 }
  0x23   : > { %610 = vmatprep.subr.bf16.mxu0 %v768_v3 }
  0x24   : > { %v212_v28 = vadd.f32 %v211_v24, %v210_v20 }
  0x26   : > { %612 = vmatpush3.bf16.msra.mxu0 %v611_v25  ;;  %v213_v32 = vrot.slane %v212_v28, 1 }
  0x27   : > { %613 = vmatprep.subr.bf16.mxu0 %v768_v3 }
  0x28   : > { %v214_v34 = vadd.f32 %v213_v32, %v212_v28 }
  0x2a   : > { %615 = vmatpush3.bf16.msra.mxu0 %v614_v29 }
  0x2b   : > { %616 = vmatprep.subr.bf16.mxu0 %v768_v3 }
  0x2e   : > { %618 = vmatpush3.bf16.msra.mxu0 %v617_v33 }
  0x31   : > { %588 = vmatmul.mubr.f32.vlgmr.msra.gmra.mrb[0].mxu0 %v214_v34 }
 0x104   : > { %v297_v36 = vpop.f32.mrb[0].mxu0 }
 0x105   : > { %v301_v37 = vmax.f32 %v297_v36, 0.0  ;;  %v589_v38 = vpop.f32.mrb[1].mxu0 }
 0x107   : > { %593 = vmatmul.mubr.msk.f32.vlgmr.msra.gmra.mrb[0].mxu1 %vm303_vm2, %v301_v37 }
 0x1da   : > { %v377_v39 = vpop.f32.mrb[0].mxu1 }
 0x1db   : > { %v527_v40 = vmul.f32 -1.442695, %v377_v39  ;;  %v594_v41 = vpop.f32.mrb[1].mxu1 }
 0x1dd   : > { %668 = vpow2.f32 %v527_v40 }
 0x1e7   : > { %v669_v42 = vpop.eup %668 }
 0x1e8   : > { %v384_v43 = vadd.f32 1.0, %v669_v42 }
 0x1ea   : > { %670 = vrcp.f32 %v384_v43 }
 0x1f4   : > { %v671_v47 = vpop.eup %670 }
 0x1f5   : > { %v392_v48 = vrot.slane %v671_v47, %v391_v46  ;;  %388 = vst.msk [vmem:[%s200_s9] sm:$0x1] %vm387_vm3, %v671_v47 }
 0x1f6   : > { %685 = shalt.err (!%p682_p3)
}
 0x1f7   : > { %s686_s8 = scalar_lea.hbm %s923_s22, 16  ;;  %s690_s14 = scalar_lea.hbm %s1005_s4, 32 }
 0x1f8   : > { %p687_p4 = scmp.ne.s32.totalorder %s923_s22, %s686_s8  ;;  %p691_p9 = scmp.lt.u32.totalorder %s923_s22, %s1005_s4 }
 0x1f9   : > { %p692_p10 = scmp.lt.u32.totalorder %s690_s14, %s686_s8  ;;  %p694_p12 = scmp.lt.u32.totalorder %s686_s8, %s923_s22 }
 0x1fa   : > { %p688_p7 = pnand %p687_p4, %p838_p5 }
 0x1fb   : > { %p693_p11 = por %p692_p10, %p691_p9 }
 0x1fc   : > { %p689_p8 = pneg %p688_p7 }
 0x1fd   : > { %p695_p13 = por %p694_p12, %p693_p11 }
 0x1ff   : > { %p696_p0 = pnand %p695_p13, %p689_p8 }
 0x201   : > { %699 = shalt.err (!%p696_p0)
}
 0x202   : > { %620 = dma.vmem_to_hbm [thread:$0]  (%p838_p5), %s925_s10, 16, %s923_s22, %s403_s28   ;;  %v393_v49 = vmul.f32 %v392_v48, %v871_v11  ;;  %v394_v50 = vmul.f32 %v392_v48, %v873_v12 }
 0x203   : > { %s398_s27 = scalar_lea.sflag [#allocation3], %s911_s6  ;;  %s700_s29 = scalar_lea.vmem %s932_s13, 256 }
 0x204   : > { %395 = vst [vmem:[%s917_s12] sm:$0xff] %v393_v49  ;;  %396 = vst [vmem:[%s917_s12 + $0x8] sm:$0xff] %v394_v50  ;;  %p701_p1 = scmp.ne.s32.totalorder %s932_s13, %s700_s29  ;;  %s772_s30 = smov [#allocation2]  }
 0x205   : > { %s704_s5 = sshll.u32 %s772_s30, 4  ;;  %s705_s5 = int_to_ptr.vmem [resolvable:$false] %s704_s5 }
 0x206   : > { %p702_p2 = pnand %p701_p1, %p838_p5  ;;  %s706_s7 = scalar_lea.vmem %s705_s5, 512 }
 0x207   : > { %p707_p4 = scmp.lt.s32.totalorder %s932_s13, %s705_s5  ;;  %p708_p7 = scmp.lt.s32.totalorder %s706_s7, %s700_s29 }
 0x208   : > { %p703_p3 = pneg %p702_p2 }
 0x209   : > { %p709_p8 = por %p708_p7, %p707_p4 }
 0x20b   : > { %p710_p9 = pnand %p709_p8, %p703_p3 }
 0x20d   : > { %713 = shalt.err (!%p710_p9)
}
 0x20e   : > { %s714_s10 = scalar_lea.hbm %s930_s19, 256  ;;  %s718_s28 = scalar_lea.hbm %s1004_s3, 512 }
 0x20f   : > { %p715_p10 = scmp.ne.s32.totalorder %s930_s19, %s714_s10  ;;  %p719_p13 = scmp.lt.u32.totalorder %s930_s19, %s1004_s3 }
 0x210   : > { %p720_p0 = scmp.lt.u32.totalorder %s718_s28, %s714_s10  ;;  %p722_p2 = scmp.lt.u32.totalorder %s714_s10, %s930_s19 }
 0x211   : > { %p716_p11 = pnand %p715_p10, %p838_p5 }
 0x212   : > { %p721_p1 = por %p720_p0, %p719_p13 }
 0x213   : > { %p717_p12 = pneg %p716_p11 }
 0x214   : > { %p723_p3 = por %p722_p2, %p721_p1 }
 0x216   : > { %p724_p4 = pnand %p723_p3, %p717_p12 }
 0x218   : > { %727 = shalt.err (!%p724_p4)
}
 0x219   : > { %s773_s11 = smov 128   ;;  %s774_s14 = smov 8  }
 0x21a   : > { %619 = dma.vmem_to_hbm [thread:$0]  (%p838_p5), %s932_s13, 256, %s930_s19, %s398_s27, %s773_s11, %s773_s11, %s774_s14  }
 0x21b PF: > { %p630_p7 = scmp.ge.s32.totalorder %s766_s18, 2  ;;  %s443_s20 = sand.u32 1, %s754_s15  }
 0x21c   : > { %s444_s23 = scalar_lea.sflag [#allocation3], %s443_s20 }
 0x21d   : > { %p624_p8 = pnand %p630_p7, %p842_p6 }
 0x21f   : > { %745 = dma.done.wait (!%p624_p8), %s444_s23, 256  }
 0x220   : > { %747 = vsyncadd (!%p624_p8), %s444_s23, 4294967040  ;;  %s453_s29 = scalar_lea.sflag [#allocation5], %s443_s20 }
 0x221   : > { %749 = dma.done.wait (!%p624_p8), %s453_s29, 16  }
 0x222   : > { %751 = vsyncadd (!%p624_p8), %s453_s29, 4294967280  ;;  %p18_p5 = scmp.ge.s32.totalorder %s825_s21, 4   ;;  %s1008_s15 = smov %s758_s16 }
 0x223   : > { %s1009_s16 = smov %s762_s17  ;;  %s1010_s17 = smov %s836_s24 }
 0x224   : > { %s1011_s18 = smov %s825_s21  ;;  %20 = sbr.rel (!%p18_p5) target bundleno = 5 (0x5), region = 84 }
 0x22b   :  { %457 = vsyncpa [#allocation3], 1 }
 0x22c   :  { %459 = vsyncpa [#allocation3 + $0x1], 1 }
 0x22d   :  { %460 = vsyncpa [#allocation5], 1 }
 0x22e   :  { %462 = vsyncpa [#allocation5 + $0x1], 1 }

</bundles_post_ra>
